<compile_context>
chip_gen: v7x
topology: tpu7x:2x2x1
jax: 0.10.0
libtpu: 0.0.40
codegen_flags: <defaults>
</compile_context>

<pallas_src>
import functools

import jax
import jax.numpy as jnp
from jax.experimental import pallas as pl
from jax.experimental.pallas import tpu as pltpu

# ControllerArgs defaults (small shapes; module default hidden is 100)
HIDDEN_SIZE = 32
SOFTMAX_TEMP = 5.0
TANH_C = 2.5
INIT_RANGE = 0.1
MODE = "train"

# Synthetic search space: one action branch ("gnn") with 8 choices.
SEARCH_SPACE = {"gnn": 8}

LANE = 128


def _round_up(x, m):
    return (x + m - 1) // m * m


def nas_controller_fwd_kernel(xhc_ref, w_ref, b_ref, out_ref, *,
                              hidden_size, dec_width, out_width):
    """One controller step.

    xhc_ref: (B, 3H) f32   -- [x | h | c]
    w_ref:   (3H, W) bf16  -- rows [0:2H, :4H] = [W_ih^T; W_hh^T], rows [2H:3H, :Dp] = W_dec^T (zero pad)
    b_ref:   (2, W)  f32   -- row 0 [:4H] = b_ih + b_hh, row 1 [:Dp] = b_dec
    out_ref: (B, out_width) f32 -- [logits (Dp) | hx (H) | cx (H) | zero pad]
    """
    H = hidden_size
    Dp = dec_width

    # --- fused LSTMCell gate matmul (bf16 operands, f32 accumulate, one MXU push)
    xh = xhc_ref[:, : 2 * H].astype(jnp.bfloat16)                  # (B, 2H)
    c = xhc_ref[:, 2 * H : 3 * H]                                  # (B, H) f32
    gates = (
        jnp.dot(xh, w_ref[: 2 * H, : 4 * H],
                preferred_element_type=jnp.float32)
        + b_ref[0:1, : 4 * H]
    )                                                              # (B, 4H) f32

    # transcendentals once on the full (B, 4H) vreg, then slice per gate (i,f,g,o)
    sig = jax.nn.sigmoid(gates)
    th = jnp.tanh(gates)
    i_g = sig[:, 0 * H : 1 * H]
    f_g = sig[:, 1 * H : 2 * H]
    g_g = th[:, 2 * H : 3 * H]
    o_g = sig[:, 3 * H : 4 * H]

    cx = f_g * c + i_g * g_g
    hx = o_g * jnp.tanh(cx)

    # --- decoder (lane-dense padded width Dp), temperature scale, tanh clamp
    logits = (
        jnp.dot(hx.astype(jnp.bfloat16), w_ref[2 * H : 3 * H, :Dp],
                preferred_element_type=jnp.float32)
        + b_ref[1:2, :Dp]
    ) * (1.0 / SOFTMAX_TEMP)
    if MODE == "train":
        logits = TANH_C * jnp.tanh(logits)

    # --- single packed, lane-dense output store
    pieces = [logits, hx, cx]
    used = Dp + 2 * H
    if out_width > used:
        pieces.append(jnp.zeros((xhc_ref.shape[0], out_width - used), jnp.float32))
    out_ref[...] = jnp.concatenate(pieces, axis=1)


def nas_controller_forward(x, h, c, params, num_actions):
    """logits, (hx, cx) = NasController.forward(x, (h, c), action)."""
    w_pack, b_pack = params
    B, H = x.shape
    Dp = _round_up(max(num_actions, 1), LANE)
    out_width = _round_up(Dp + 2 * H, LANE)

    # pack activations into a single input DMA
    xhc = jnp.concatenate([x, h, c], axis=1)                       # (B, 3H) f32

    vmem = pl.BlockSpec(memory_space=pltpu.MemorySpace.VMEM)
    kernel = functools.partial(
        nas_controller_fwd_kernel,
        hidden_size=H, dec_width=Dp, out_width=out_width)

    out = pl.pallas_call(
        kernel,
        out_shape=jax.ShapeDtypeStruct((B, out_width), jnp.float32),
        in_specs=[vmem, vmem, vmem],
        out_specs=vmem,
    )(xhc, w_pack, b_pack)

    logits = out[:, :num_actions]
    hx = out[:, Dp : Dp + H]
    cx = out[:, Dp + H : Dp + 2 * H]
    return logits, (hx, cx)


def init_params(key, hidden_size, num_actions):
    """reset_parameters(): uniform(-init_range, init_range), decoder bias zeroed.
    Weights are fused / transposed / zero-padded / bf16-cast for the kernel."""
    H, A = hidden_size, num_actions
    Dp = _round_up(max(A, 1), LANE)
    W = max(4 * H, Dp)

    ks = jax.random.split(key, 5)
    u = lambda k, shape: jax.random.uniform(
        k, shape, dtype=jnp.float32, minval=-INIT_RANGE, maxval=INIT_RANGE)
    w_ih = u(ks[0], (4 * H, H))          # torch layout (4H, H), gate order i,f,g,o
    w_hh = u(ks[1], (4 * H, H))
    b_ih = u(ks[2], (4 * H,))
    b_hh = u(ks[3], (4 * H,))
    w_dec = u(ks[4], (A, H))             # torch Linear (A, H)
    b_dec = jnp.zeros((A,), jnp.float32)  # bias.data.fill_(0)

    # one bf16 weight slab: rows [0:2H]=[W_ih^T;W_hh^T] (lanes 0:4H), rows [2H:3H]=W_dec^T (lanes 0:A)
    w_pack = jnp.zeros((3 * H, W), jnp.float32)
    w_pack = w_pack.at[: 2 * H, : 4 * H].set(
        jnp.concatenate([jnp.transpose(w_ih), jnp.transpose(w_hh)], axis=0))
    w_pack = w_pack.at[2 * H :, :A].set(jnp.transpose(w_dec))
    w_pack = w_pack.astype(jnp.bfloat16)

    # one f32 bias slab: row 0 = fused LSTM bias, row 1 = decoder bias
    b_pack = jnp.zeros((2, W), jnp.float32)
    b_pack = b_pack.at[0, : 4 * H].set(b_ih + b_hh)
    b_pack = b_pack.at[1, :A].set(b_dec)
    return w_pack, b_pack


def reference_forward(x, h, c, params, hidden_size, num_actions):
    """Pure-JAX reference of LSTMCell + decoder forward, mirroring the kernel's
    bf16-operand / f32-accumulate matmuls (products of bf16 values are exact in f32)."""
    w_pack, b_pack = params
    H, A = hidden_size, num_actions
    hp = jax.lax.Precision.HIGHEST

    w_gates = w_pack[: 2 * H, : 4 * H].astype(jnp.float32)
    w_dec = w_pack[2 * H :, :A].astype(jnp.float32)
    b_gates = b_pack[0:1, : 4 * H]
    b_dec = b_pack[1:2, :A]

    xh = jnp.concatenate([x, h], axis=1).astype(jnp.bfloat16).astype(jnp.float32)
    gates = jnp.dot(xh, w_gates, precision=hp) + b_gates
    i_g = jax.nn.sigmoid(gates[:, 0 * H : 1 * H])
    f_g = jax.nn.sigmoid(gates[:, 1 * H : 2 * H])
    g_g = jnp.tanh(gates[:, 2 * H : 3 * H])
    o_g = jax.nn.sigmoid(gates[:, 3 * H : 4 * H])
    cx = f_g * c + i_g * g_g
    hx = o_g * jnp.tanh(cx)

    hx_b = hx.astype(jnp.bfloat16).astype(jnp.float32)
    logits = (jnp.dot(hx_b, w_dec, precision=hp) + b_dec) / SOFTMAX_TEMP
    logits = TANH_C * jnp.tanh(logits)
    return logits, hx, cx


if __name__ == "__main__":
    key = jax.random.PRNGKey(0)
    B = 2
    H = HIDDEN_SIZE
    A = SEARCH_SPACE["gnn"]

    k_param, k_x = jax.random.split(key)
    params = init_params(k_param, H, A)

    # sample() starts from zero inputs / zero hidden state; use a small random
    # embedding-like input here to exercise the general forward path.
    x = jax.random.normal(k_x, (B, H), dtype=jnp.float32) * 0.1
    h0 = jnp.zeros((B, H), jnp.float32)
    c0 = jnp.zeros((B, H), jnp.float32)

    fwd = jax.jit(nas_controller_forward, static_argnums=(4,))
    logits, (hx, cx) = fwd(x, h0, c0, params, A)
    jax.block_until_ready((logits, hx, cx))

    ref_logits, ref_hx, ref_cx = reference_forward(x, h0, c0, params, H, A)
    assert logits.shape == (B, A) and hx.shape == (B, H) and cx.shape == (B, H)
    assert jnp.allclose(logits, ref_logits, atol=1e-4, rtol=1e-4)
    assert jnp.allclose(hx, ref_hx, atol=1e-4, rtol=1e-4)
    assert jnp.allclose(cx, ref_cx, atol=1e-4, rtol=1e-4)

    print("KERNEL_OK")
</pallas_src>

<mosaic_0001>
module attributes {stable_mosaic.version = 11 : i64} {
  func.func @nas_controller_fwd_kernel(%arg0: memref<2x96xf32, #tpu.memory_space<vmem>>, %arg1: memref<96x128xbf16, #tpu.memory_space<vmem>>, %arg2: memref<2x128xf32, #tpu.memory_space<vmem>>, %arg3: memref<2x256xf32, #tpu.memory_space<vmem>>) attributes {dimension_semantics = [], scalar_prefetch = 0 : i64, scratch_operands = 0 : i64, tpu.core_type = #tpu.core_type<tc>} {
    %c0 = arith.constant 0 : index
    %c0_0 = arith.constant 0 : index
    %0 = vector.load %arg0[%c0, %c0_0] : memref<2x96xf32, #tpu.memory_space<vmem>>, vector<2x64xf32>
    %1 = arith.truncf %0 : vector<2x64xf32> to vector<2x64xbf16>
    %c0_1 = arith.constant 0 : index
    %c64 = arith.constant 64 : index
    %2 = vector.load %arg0[%c0_1, %c64] : memref<2x96xf32, #tpu.memory_space<vmem>>, vector<2x32xf32>
    %c0_2 = arith.constant 0 : index
    %c0_3 = arith.constant 0 : index
    %3 = vector.load %arg1[%c0_2, %c0_3] : memref<96x128xbf16, #tpu.memory_space<vmem>>, vector<64x128xbf16>
    %cst = arith.constant dense<0.000000e+00> : vector<2x128xf32>
    %4 = tpu.matmul %1, %3, %cst {dimension_numbers = #tpu.dot_dimension_numbers<[1], [0], [0], [1], [0, 0, 1, 1], [], []>} : vector<2x64xbf16>, vector<64x128xbf16>, vector<2x128xf32> -> vector<2x128xf32>
    %c0_4 = arith.constant 0 : index
    %c0_5 = arith.constant 0 : index
    %5 = vector.load %arg2[%c0_4, %c0_5] : memref<2x128xf32, #tpu.memory_space<vmem>>, vector<1x128xf32>
    %6 = vector.broadcast %5 : vector<1x128xf32> to vector<2x128xf32>
    %7 = arith.addf %4, %6 : vector<2x128xf32>
    %8 = arith.negf %7 : vector<2x128xf32>
    %9 = math.exp %8 : vector<2x128xf32>
    %cst_6 = arith.constant 1.000000e+00 : f32
    %10 = vector.broadcast %cst_6 : f32 to vector<2x128xf32>
    %11 = arith.addf %10, %9 : vector<2x128xf32>
    %12 = arith.divf %10, %11 : vector<2x128xf32>
    %13 = math.tanh %7 : vector<2x128xf32>
    %14 = vector.extract_strided_slice %12 {offsets = [0, 0], sizes = [2, 32], strides = [1, 1]} : vector<2x128xf32> to vector<2x32xf32>
    %15 = vector.extract_strided_slice %12 {offsets = [0, 32], sizes = [2, 32], strides = [1, 1]} : vector<2x128xf32> to vector<2x32xf32>
    %16 = vector.extract_strided_slice %13 {offsets = [0, 64], sizes = [2, 32], strides = [1, 1]} : vector<2x128xf32> to vector<2x32xf32>
    %17 = vector.extract_strided_slice %12 {offsets = [0, 96], sizes = [2, 32], strides = [1, 1]} : vector<2x128xf32> to vector<2x32xf32>
    %18 = arith.mulf %15, %2 : vector<2x32xf32>
    %19 = arith.mulf %14, %16 : vector<2x32xf32>
    %20 = arith.addf %18, %19 : vector<2x32xf32>
    %21 = math.tanh %20 : vector<2x32xf32>
    %22 = arith.mulf %17, %21 : vector<2x32xf32>
    %23 = arith.truncf %22 : vector<2x32xf32> to vector<2x32xbf16>
    %c64_7 = arith.constant 64 : index
    %c0_8 = arith.constant 0 : index
    %24 = vector.load %arg1[%c64_7, %c0_8] : memref<96x128xbf16, #tpu.memory_space<vmem>>, vector<32x128xbf16>
    %cst_9 = arith.constant dense<0.000000e+00> : vector<2x128xf32>
    %25 = tpu.matmul %23, %24, %cst_9 {dimension_numbers = #tpu.dot_dimension_numbers<[1], [0], [0], [1], [0, 0, 1, 1], [], []>} : vector<2x32xbf16>, vector<32x128xbf16>, vector<2x128xf32> -> vector<2x128xf32>
    %c1 = arith.constant 1 : index
    %c0_10 = arith.constant 0 : index
    %26 = vector.load %arg2[%c1, %c0_10] : memref<2x128xf32, #tpu.memory_space<vmem>>, vector<1x128xf32>
    %27 = vector.broadcast %26 : vector<1x128xf32> to vector<2x128xf32>
    %28 = arith.addf %25, %27 : vector<2x128xf32>
    %cst_11 = arith.constant 2.000000e-01 : f32
    %29 = vector.broadcast %cst_11 : f32 to vector<2x128xf32>
    %30 = arith.mulf %28, %29 : vector<2x128xf32>
    %31 = math.tanh %30 : vector<2x128xf32>
    %cst_12 = arith.constant 2.500000e+00 : f32
    %32 = vector.broadcast %cst_12 : f32 to vector<2x128xf32>
    %33 = arith.mulf %32, %31 : vector<2x128xf32>
    %cst_13 = arith.constant 0.000000e+00 : f32
    %34 = vector.broadcast %cst_13 : f32 to vector<2x64xf32>
    %35 = tpu.concatenate %33, %22, %20, %34 in 1 : vector<2x128xf32>, vector<2x32xf32>, vector<2x32xf32>, vector<2x64xf32> -> vector<2x256xf32>
    %c0_14 = arith.constant 0 : index
    %c0_15 = arith.constant 0 : index
    %36 = vector.load %arg3[%c0_14, %c0_15] : memref<2x256xf32, #tpu.memory_space<vmem>>, vector<2x256xf32>
    tpu.vector_store %arg3[%c0_14, %c0_15], %35 {strides = array<i32>} : memref<2x256xf32, #tpu.memory_space<vmem>>, vector<2x256xf32>,
    return
  }
}

</mosaic_0001>

<bundles_post_ra>
// kernel: nas_controller_forward.1
= control target key start
LH: loop header
LB: loop body
LE: loop exit
PB: predicated region body
PF: predicated region fallthrough
CT: control target
= control target key end

     0   :  { %8 = vsyncpa [#allocation3], 0  ;;  %s322_s12 = smov [#allocation2]   ;;  %s379_s0 = inlined_call_operand.vmem [shape: f32[2,96], index: 0, kind: input, shape index: {}]   ;;  %s380_s1 = inlined_call_operand.hbm [shape: bf16[96,128], index: 1, kind: input, shape index: {}]   ;;  %s381_s2 = inlined_call_operand.vmem [shape: f32[2,128], index: 2, kind: input, shape index: {}]   ;;  %s382_s3 = inlined_call_operand.vmem [shape: f32[2,256], index: 3, kind: output, shape index: {}]  }
   0x1   :  { %s16_s13 = sshll.u32 %s322_s12, 4  ;;  %s298_s16 = scalar_lea.hbm %s380_s1, 768  ;;  %s17_s13 = int_to_ptr.vmem [resolvable:$true] %s16_s13 }
   0x2   :  { %p299_p0 = scmp.ne.s32.totalorder %s380_s1, %s298_s16  ;;  %p302_p1 = scmp.lt.u32.totalorder %s298_s16, %s380_s1 }
   0x4   :  { %p304_p2 = pnand %p302_p1, %p299_p0 }
   0x6   :  { %307 = shalt.err (!%p304_p2)
}
   0x7   :  { %s308_s21 = scalar_lea.vmem %s17_s13, 768  ;;  %p313_p4 = scmp.lt.s32.totalorder %s17_s13, %s17_s13 }
   0x8   :  { %p309_p3 = scmp.ne.s32.totalorder %s17_s13, %s308_s21  ;;  %p314_p5 = scmp.lt.s32.totalorder %s308_s21, %s308_s21 }
   0xa   :  { %p315_p6 = por %p314_p5, %p313_p4 }
   0xc   :  { %p316_p7 = pnand %p315_p6, %p309_p3 }
   0xe   :  { %319 = shalt.err (!%p316_p7)
}
   0xf   :  { %s323_s22 = smov 64   ;;  %s324_s23 = smov 4  }
  0x10   :  { %22 = dma.hbm_to_vmem [thread:$0]  %s380_s1, 768, %s17_s13, [#allocation3], %s323_s22, %s323_s22, %s324_s23  }
  0x11   :  { %320 = dma.done.wait [#allocation3], 768  }
  0x12   :  { %321 = vsyncadd [#allocation3], 4294966528  ;;  %v325_v0 = vmov 0.0   ;;  %vm326_vm0 = vmmov 0   ;;  %v282_v1 = vld [vmem:[#allocation2] sm:$0xff]   ;;  %v283_v2 = vld [vmem:[#allocation2 + $0x8] sm:$0xff]  }
  0x13   :  { %255 = vmatprep.subr.bf16.mxu0 %v325_v0  ;;  %263 = vmatprep.mubr.msk.bf16.mxu0 %vm326_vm0, %v325_v0  ;;  %v284_v3 = vld [vmem:[#allocation2 + $0x10] sm:$0xff]   ;;  %v285_v4 = vld [vmem:[#allocation2 + $0x18] sm:$0xff]   ;;  %v29_v5 = vld [vmem:[%s379_s0] sm:$0x3]  ;;  %vm68_vm1 = vcmask 523264   ;;  %s327_s0 = smov 96  }
  0x14   :  { %267 = vmatprep.subr.bf16.mxu1 %v325_v0  ;;  %271 = vmatprep.mubr.msk.bf16.mxu1 %vm326_vm0, %v325_v0  ;;  %v30_v6 = vpack.c.bf16 %v29_v5, %v29_v5  ;;  %v235_v7 = vld [vmem:[%s381_s2] ss:$0 sm:$0xff]  ;;  %s328_s29 = smov 32   ;;  %v287_v25 = vld [vmem:[#allocation2 + $0x28] sm:$0xff]   ;;  %vm165_vm2 = vcmask 261120  }
  0x15   :  { %256 = vmatpush3.bf16.msra.mxu0 %v282_v1  ;;  %v286_v24 = vld [vmem:[#allocation2 + $0x20] sm:$0xff]  }
  0x16   :  { %257 = vmatprep.subr.bf16.mxu0 %v325_v0  ;;  %268 = vmatpush3.bf16.msra.mxu1 %v286_v24  ;;  %v242_v31 = vld [vmem:[%s381_s2 + $0x1] ss:$0 sm:$0xff] }
  0x17   :  { %269 = vmatprep.subr.bf16.mxu1 %v325_v0 }
  0x19   :  { %258 = vmatpush3.bf16.msra.mxu0 %v283_v2 }
  0x1a   :  { %259 = vmatprep.subr.bf16.mxu0 %v325_v0  ;;  %270 = vmatpush3.bf16.msra.mxu1 %v287_v25 }
  0x1d   :  { %260 = vmatpush3.bf16.msra.mxu0 %v284_v3 }
  0x1e   :  { %261 = vmatprep.subr.bf16.mxu0 %v325_v0 }
  0x21   :  { %262 = vmatpush3.bf16.msra.mxu0 %v285_v4 }
  0x24   :  { %264 = vmatmul.mubr.msk.bf16.vlgmr.msra.gmra.mrb[0].mxu0 %vm68_vm1, %v30_v6 }
  0xf7   :  { %v106_v8 = vpop.f32.mrb[0].mxu0 }
  0xf8   :  { %v107_v9 = vadd.f32 %v235_v7, %v106_v8  ;;  %v265_v10 = vpop.f32.mrb[1].mxu0 }
  0xf9   :  { %v109_v11 = vpop.f32.mrb[2].mxu0 }
  0xfa   :  { %v266_v12 = vpop.f32.mrb[3].mxu0  ;;  %288 = vtanh.f32 %v107_v9  ;;  %v241_v14 = vmul.f32 -1.442695, %v107_v9 }
  0xfc   :  { %290 = vpow2.f32 %v241_v14 }
 0x104   :  { %v289_v13 = vpop.eup %288 }
 0x105   :  { %125 = vrot.lane.b32.xlu0 %v289_v13, %s323_s22 }
 0x106   :  { %v291_v15 = vpop.eup %290 }
 0x107   :  { %v115_v16 = vadd.f32 1.0, %v291_v15 }
 0x109   :  { %120 = vrot.lane.b32.xlu0 %v29_v5, %s327_s0  ;;  %292 = vrcp.f32 %v115_v16 }
 0x113   :  { %v293_v17 = vpop.eup %292 }
 0x177   :  { %v126_v18 = vpop.permute.xlu0 %125 }
 0x178   :  { %v128_v19 = vmul.f32 %v293_v17, %v126_v18 }
 0x17a   :  { %130 = vrot.lane.b32.xlu1 %v128_v19, %s328_s29 }
 0x17b   :  { %v121_v20 = vpop.permute.xlu0 %120 }
 0x17c   :  { %v123_v21 = vmul.f32 %v293_v17, %v121_v20 }
 0x1ec   :  { %v131_v22 = vpop.permute.xlu1 %130 }
 0x1ed   :  { %v133_v23 = vadd.f32 %v131_v22, %v123_v21 }
 0x1ef   :  { %294 = vtanh.f32 %v133_v23 }
 0x1f9   :  { %v295_v26 = vpop.eup %294 }
 0x1fa   :  { %136 = vrot.lane.b32.xlu1 %v295_v26, %s323_s22 }
 0x26c   :  { %v137_v27 = vpop.permute.xlu1 %136 }
 0x26d   :  { %v139_v28 = vmul.f32 %v293_v17, %v137_v27 }
 0x26f   :  { %v140_v29 = vpack.c.bf16 %v139_v28, %v139_v28  ;;  %213 = vrot.lane.b32.xlu1 %v139_v28, %s328_s29 }
 0x271   :  { %151 = vrot.lane.b32.xlu0 %v140_v29, %s328_s29 }
 0x2e1   :  { %v214_v38 = vpop.permute.xlu1 %213 }
 0x2e2   :  { %v216_v39 = vsel %vm165_vm2, %v214_v38, %v133_v23 }
 0x2e3   :  { %v152_v30 = vpop.permute.xlu0 %151  ;;  %v217_v42 = vsel %vm68_vm1, %v216_v39, 0.0 }
 0x2e4   :  { %272 = vmatmul.mubr.msk.bf16.vlgmr.msra.gmra.mrb[0].mxu1 %vm165_vm2, %v152_v30 }
 0x3b7   :  { %v203_v32 = vpop.f32.mrb[0].mxu1 }
 0x3b8   :  { %v204_v33 = vadd.f32 %v242_v31, %v203_v32  ;;  %v273_v34 = vpop.f32.mrb[1].mxu1 }
 0x3b9   :  { %v206_v35 = vpop.f32.mrb[2].mxu1 }
 0x3ba   :  { %v209_v36 = vmul.f32 0.2, %v204_v33  ;;  %v274_v37 = vpop.f32.mrb[3].mxu1 }
 0x3bc   :  { %296 = vtanh.f32 %v209_v36 }
 0x3c6   :  { %v297_v40 = vpop.eup %296 }
 0x3c7   :  { %v211_v41 = vmul.f32 2.5, %v297_v40 }
 0x3c9   :  { %v220_v43 = vcombine.low %v211_v41, %v217_v42 }
 0x3cb   :  { %246 = vst.sshfl [vmem:[%s382_s3] sm:$0x33 pattern:$0x76325410] %v220_v43 }
 0x3cc   :  { %234 = vsyncpa [#allocation3], 1 }

</bundles_post_ra>
